<compile_context>
chip_gen: v6e
topology: v6e:2x2x1
jax: 0.10.0
libtpu: 0.0.40
codegen_flags: <defaults>
</compile_context>

<pallas_src>
import functools

import jax
import jax.numpy as jnp
from jax.experimental import pallas as pl
from jax.experimental.pallas import tpu as pltpu


def _round_up(x, m):
    return ((x + m - 1) // m) * m


def _skip_linear_kernel(*refs, mxu_dtype, full_width):
    if full_width:
        x_ref, w_ref, b_ref, o_ref = refs
    else:
        x_ref, res_ref, w_ref, b_ref, o_ref = refs

    x = x_ref[...]                                       # (tm, K)
    # bf16 (or requested-dtype) MXU pass, f32 accumulation; w_ref is (K, tn),
    # already transposed/cast in the wrapper -> no in-kernel weight transpose.
    y = jnp.dot(x.astype(mxu_dtype), w_ref[...],
                preferred_element_type=jnp.float32)
    y = y + b_ref[...].astype(jnp.float32)

    res = x if full_width else res_ref[...]
    o_ref[...] = (res.astype(jnp.float32) + y).astype(o_ref.dtype)


def skip_connection_linear(x, w, b, *, tm=512, tn=None,
                           mxu_dtype=jnp.bfloat16,
                           vmem_budget_bytes=48 * 1024 * 1024):
    """Fused out = x + x @ w.T + b.

    x: (..., H)   w: (H, H) torch-style (out_features, in_features)   b: (H,)
    """
    orig_shape = x.shape
    H = orig_shape[-1]
    M = 1
    for d in orig_shape[:-1]:
        M *= d
    x2 = x.reshape(M, H)

    x_it = jnp.dtype(x.dtype).itemsize
    o_it = x_it
    w_it = jnp.dtype(mxu_dtype).itemsize

    # Dtype-aware sublane packing (f32: 8, bf16: 16, int8/fp8: 32).
    sub = {4: 8, 2: 16, 1: 32}.get(x_it, 8)

    # Row tile: large by default (amortizes ~0.35 us/step pipeline overhead),
    # clamped for small inputs, always a packing multiple.
    tm = _round_up(max(sub, min(tm, _round_up(M, sub))), sub)

    def footprint(tm_, tn_):
        tiled = tn_ < H
        f = 2 * tm_ * H * x_it                      # double-buffered activations
        f += (2 if tiled else 1) * H * tn_ * w_it   # weight tile
        f += 2 * tm_ * tn_ * o_it                   # output tile
        f += 2 * tn_ * 4                            # bias (negligible)
        if tiled:
            f += 2 * tm_ * tn_ * x_it               # aligned residual tile
        return f

    # Output-column tile: whole width if it fits the VMEM budget, otherwise the
    # largest 128-multiple divisor of H that fits (keeps v7x's 64 MiB happy).
    if tn is None:
        if footprint(tm, H) <= vmem_budget_bytes:
            tn = H
        else:
            divs = [d for d in range(128, H, 128) if H % d == 0]
            fitting = [d for d in divs if footprint(tm, d) <= vmem_budget_bytes]
            if fitting:
                tn = max(fitting)
            elif divs:
                tn = min(divs)
            else:
                tn = H  # TODO(synk): K-tiled f32-accumulator path for huge, non-128-divisible H.
    else:
        assert tn == H or (H % tn == 0 and tn % 128 == 0), \
            "tn must divide H and be a multiple of 128 (or equal H)"

    # If still over budget, shrink the row tile.
    while footprint(tm, tn) > vmem_budget_bytes and tm > sub:
        tm = max(sub, _round_up(tm // 2, sub))

    # Megacore: v7x has 2 TensorCores sharded over "parallel" axes — make sure
    # the grid has >= 2 steps whenever M allows it.
    if tn == H and pl.cdiv(M, tm) < 2 and M > sub:
        tm = _round_up(pl.cdiv(M, 2), sub)

    n_m = pl.cdiv(M, tm)
    n_n = H // tn
    full_width = (n_n == 1)

    # One-time (per call, outside the grid loop) weight transpose + cast so the
    # MXU sees a (K, N) bf16 operand.
    w_k = jnp.asarray(w.T, dtype=mxu_dtype)
    b2 = b.reshape(1, H)

    if full_width:
        grid = (n_m,)
        in_specs = [
            pl.BlockSpec((tm, H), lambda i: (i, 0)),
            # Block index never changes -> single-buffer weight and bias.
            pl.BlockSpec((H, H), lambda i: (0, 0), pipeline_mode=pl.Buffered(1)),
            pl.BlockSpec((1, H), lambda i: (0, 0), pipeline_mode=pl.Buffered(1)),
        ]
        out_spec = pl.BlockSpec((tm, H), lambda i: (i, 0))
        dims = ("parallel",)
        operands = (x2, w_k, b2)
    else:
        # Pick grid order minimizing HBM restreaming:
        #   rows outer -> weight restreamed n_m times, activations streamed once
        #   cols outer -> weight streamed once, activations restreamed n_n times
        rows_outer_bytes = n_m * H * H * w_it + M * H * x_it
        cols_outer_bytes = H * H * w_it + n_n * M * H * x_it
        if rows_outer_bytes <= cols_outer_bytes:
            grid = (n_m, n_n)
            x_spec = pl.BlockSpec((tm, H), lambda i, j: (i, 0))
            res_spec = pl.BlockSpec((tm, tn), lambda i, j: (i, j))
            w_spec = pl.BlockSpec((H, tn), lambda i, j: (0, j))
            b_spec = pl.BlockSpec((1, tn), lambda i, j: (0, j))
            out_spec = pl.BlockSpec((tm, tn), lambda i, j: (i, j))
        else:
            grid = (n_n, n_m)
            x_spec = pl.BlockSpec((tm, H), lambda j, i: (i, 0))
            res_spec = pl.BlockSpec((tm, tn), lambda j, i: (i, j))
            w_spec = pl.BlockSpec((H, tn), lambda j, i: (0, j))
            b_spec = pl.BlockSpec((1, tn), lambda j, i: (0, j))
            out_spec = pl.BlockSpec((tm, tn), lambda j, i: (i, j))
        in_specs = [x_spec, res_spec, w_spec, b_spec]
        dims = ("parallel", "parallel")
        operands = (x2, x2, w_k, b2)

    kernel = functools.partial(_skip_linear_kernel, mxu_dtype=mxu_dtype,
                               full_width=full_width)

    vmem_limit = int(min(60 * 1024 * 1024,
                         max(16 * 1024 * 1024, footprint(tm, tn) * 1.3)))

    cost = pl.CostEstimate(
        flops=2 * M * H * H + 2 * M * H,
        transcendentals=0,
        bytes_accessed=M * H * (x_it + o_it) + H * H * w_it + H * 4,
    )

    out2 = pl.pallas_call(
        kernel,
        out_shape=jax.ShapeDtypeStruct((M, H), x.dtype),
        grid_spec=pltpu.PrefetchScalarGridSpec(
            num_scalar_prefetch=0,
            grid=grid,
            in_specs=in_specs,
            out_specs=out_spec,
        ),
        compiler_params=pltpu.CompilerParams(
            dimension_semantics=dims,
            vmem_limit_bytes=vmem_limit,
        ),
        cost_estimate=cost,
    )(*operands)

    return out2.reshape(orig_shape)


if __name__ == "__main__":
    key = jax.random.PRNGKey(0)
    B, S, H = 2, 8, 32
    kx, kw, kb = jax.random.split(key, 3)

    x = jax.random.normal(kx, (B, S, H), dtype=jnp.float32)
    # nn.Linear(H, H)-shaped parameters (weight in torch (out, in) layout).
    bound = 1.0 / (H ** 0.5)
    w = jax.random.uniform(kw, (H, H), minval=-bound, maxval=bound,
                           dtype=jnp.float32)
    b = jax.random.uniform(kb, (H,), minval=-bound, maxval=bound,
                           dtype=jnp.float32)

    out = skip_connection_linear(x, w, b)
    jax.block_until_ready(out)

    # Reference: input + module(input), module = Linear(H, H), computed in f32.
    # The kernel's matmul runs in bf16 with f32 accumulation, so compare with a
    # bf16-appropriate tolerance.
    ref = x + (jnp.einsum("bsh,oh->bso", x, w) + b)
    assert out.shape == ref.shape and out.dtype == ref.dtype
    assert jnp.allclose(out, ref, atol=3e-2, rtol=3e-2), "mismatch vs reference"

    print("KERNEL_OK")
</pallas_src>

<mosaic_0001>
module attributes {stable_mosaic.version = 11 : i64} {
  func.func @_skip_linear_kernel(%arg0: i32, %arg1: memref<8x32xf32, #tpu.memory_space<vmem>>, %arg2: memref<32x32xbf16, #tpu.memory_space<vmem>>, %arg3: memref<1x32xf32, #tpu.memory_space<vmem>>, %arg4: memref<8x32xf32, #tpu.memory_space<vmem>>) attributes {dimension_semantics = [#tpu.dimension_semantics<parallel>], iteration_bounds = array<i64: 2>, scalar_prefetch = 0 : i64, scratch_operands = 0 : i64, tpu.core_type = #tpu.core_type<tc>, window_params = [{transform_indices = @transform_0, window_bounds = array<i64: 8, 32>}, {pipeline_mode = #tpu.pipeline_mode<synchronous>, transform_indices = @transform_1, window_bounds = array<i64: 32, 32>}, {pipeline_mode = #tpu.pipeline_mode<synchronous>, transform_indices = @transform_2, window_bounds = array<i64: 1, 32>}, {transform_indices = @transform_3, window_bounds = array<i64: 8, 32>}]} {
    %c0 = arith.constant 0 : index
    %c0_0 = arith.constant 0 : index
    %0 = vector.load %arg1[%c0, %c0_0] : memref<8x32xf32, #tpu.memory_space<vmem>>, vector<8x32xf32>
    %1 = arith.truncf %0 : vector<8x32xf32> to vector<8x32xbf16>
    %c0_1 = arith.constant 0 : index
    %c0_2 = arith.constant 0 : index
    %2 = vector.load %arg2[%c0_1, %c0_2] : memref<32x32xbf16, #tpu.memory_space<vmem>>, vector<32x32xbf16>
    %cst = arith.constant dense<0.000000e+00> : vector<8x32xf32>
    %3 = tpu.matmul %1, %2, %cst {dimension_numbers = #tpu.dot_dimension_numbers<[1], [0], [0], [1], [0, 0, 1, 1], [], []>} : vector<8x32xbf16>, vector<32x32xbf16>, vector<8x32xf32> -> vector<8x32xf32>
    %c0_3 = arith.constant 0 : index
    %c0_4 = arith.constant 0 : index
    %4 = vector.load %arg3[%c0_3, %c0_4] : memref<1x32xf32, #tpu.memory_space<vmem>>, vector<1x32xf32>
    %5 = vector.broadcast %4 : vector<1x32xf32> to vector<8x32xf32>
    %6 = arith.addf %3, %5 : vector<8x32xf32>
    %7 = arith.addf %0, %6 : vector<8x32xf32>
    %c0_5 = arith.constant 0 : index
    %c0_6 = arith.constant 0 : index
    %8 = vector.load %arg4[%c0_5, %c0_6] : memref<8x32xf32, #tpu.memory_space<vmem>>, vector<8x32xf32>
    tpu.vector_store %arg4[%c0_5, %c0_6], %7 {strides = array<i32>} : memref<8x32xf32, #tpu.memory_space<vmem>>, vector<8x32xf32>,
    return
  }
  func.func @transform_0(%arg0: i32) -> (i32, i32) {
    %c0_i32 = arith.constant 0 : i32
    %c0_i32_0 = arith.constant 0 : i32
    return %arg0, %c0_i32 : i32, i32
  }
  func.func @transform_1(%arg0: i32) -> (i32, i32) {
    %c0_i32 = arith.constant 0 : i32
    %c0_i32_0 = arith.constant 0 : i32
    %c0_i32_1 = arith.constant 0 : i32
    return %c0_i32, %c0_i32_0 : i32, i32
  }
  func.func @transform_2(%arg0: i32) -> (i32, i32) {
    %c0_i32 = arith.constant 0 : i32
    %c0_i32_0 = arith.constant 0 : i32
    %c0_i32_1 = arith.constant 0 : i32
    return %c0_i32, %c0_i32_0 : i32, i32
  }
  func.func @transform_3(%arg0: i32) -> (i32, i32) {
    %c0_i32 = arith.constant 0 : i32
    %c0_i32_0 = arith.constant 0 : i32
    return %arg0, %c0_i32 : i32, i32
  }
}

</mosaic_0001>

<bundles_post_ra>
// kernel: tpu_custom_call.1
= control target key start
LH: loop header
LB: loop body
LE: loop exit
PB: predicated region body
PF: predicated region fallthrough
CT: control target
= control target key end

     0   :  { %8 = vsyncpa [#allocation3], 0  ;;  %s779_s0 = inlined_call_operand.hbm [shape: f32[16,32], index: 0, kind: input, shape index: {}]   ;;  %s780_s1 = inlined_call_operand.hbm [shape: bf16[32,32], index: 1, kind: input, shape index: {}]   ;;  %s781_s2 = inlined_call_operand.vmem [shape: f32[1,32], index: 2, kind: input, shape index: {}]   ;;  %s782_s3 = inlined_call_operand.hbm [shape: f32[16,32], index: 3, kind: output, shape index: {}]  }
   0x1   :  { %10 = vsyncpa [#allocation3 + $0x1], 0 }
   0x2   :  { %11 = vsyncpa [#allocation6], 0 }
   0x3   :  { %12 = vsyncpa [#allocation4], 0 }
   0x4   :  { %14 = vsyncpa [#allocation4 + $0x1], 0  ;;  %s610_s12 = smov 0   ;;  %s612_s13 = smov 0  }
   0x5   :  { %s614_s14 = smov 0   ;;  %s616_s15 = smov 0  }
   0x6 LB: > { %s631_s16 = sadd.s32 4294967295, %s581_s15   ;;  %s367_s17 = sadd.s32 4294967294, %s581_s15   ;;  %s581_s15 = sphi %s616_s15, %s804_s15   ;;  %s577_s14 = sphi %s614_s14, %s803_s14   ;;  %s573_s13 = sphi %s612_s13, %s802_s13   ;;  %s569_s12 = sphi %s610_s12, %s801_s12  }
   0x7   : > { %p40_p0 = scmp.ne.s32.totalorder %s573_s13, %s569_s12  ;;  %p783_p1 = scmp.eq.s32.totalorder %s631_s16, 0 }
   0x8   : > { %p112_p3 = scmp.eq.s32.totalorder %s367_s17, 1  ;;  %p368_p5 = scmp.ge.s32.totalorder %s581_s15, 1 }
   0x9   : > { %p640_p4 = por %p783_p1, %p40_p0  ;;  %p119_p7 = scmp.lt.s32.totalorder %s581_s15, 3 }
   0xa   : > { %p645_p6 = por %p112_p3, %p40_p0  ;;  %s583_s21 = smov [#allocation5]  }
   0xb   : > { %s787_s18 = scalar_select %p640_p4, 1, 0 }
   0xc   : > { %s788_s19 = scalar_select %p645_p6, 1, 0 }
   0xd   : > { %p650_p8 = pnand %p368_p5, %p119_p7  ;;  %s131_s22 = sshll.u32 %s583_s21, 4  ;;  %s132_s22 = int_to_ptr.vmem [resolvable:$true] %s131_s22 }
   0xe   : > { %s664_s24 = sadd.s32 1, %s581_s15   ;;  %s27_s25 = sadd.s32 1, %s577_s14 }
   0xf   : > { %s789_s20 = scalar_select %p650_p8, 1, 0 }
  0x10   : > { %p404_p9 = pneg %p650_p8  ;;  %s24_s26 = ssub.s32 %s581_s15, %s664_s24 }
  0x11   : > { %s470_s27 = scalar_lea.vmem %s132_s22, 256  ;;  %p478_p5 = scmp.lt.s32.totalorder %s132_s22, %s132_s22 }
  0x12   : > { %p659_p11 = pnand %p404_p9, %p783_p1  ;;  %p471_p13 = scmp.ne.s32.totalorder %s132_s22, %s470_s27 }
  0x13   : > { %p479_p7 = scmp.lt.s32.totalorder %s470_s27, %s470_s27 }
  0x14   : > { %p461_p12 = pneg %p659_p11 }
  0x15   : > { %p480_p10 = por %p479_p7, %p478_p5 }
  0x16   : > { %p473_p0 = pnand %p471_p13, %p461_p12 }
  0x18   : > { %p474_p3 = pneg %p473_p0 }
  0x1a   : > { %p481_p2 = pnand %p480_p10, %p474_p3 }
  0x1c   : > { %484 = shalt.err (!%p481_p2)
}
  0x1d   : > { %s584_s28 = smov 64   ;;  %s585_s29 = smov 4  }
  0x1e   : > { %407 = dma.hbm_to_vmem [thread:$0]  (!%p659_p11), %s780_s1, 256, %s132_s22, [#allocation6], %s584_s28, %s584_s28, %s585_s29  }
  0x1f   : > { %p25_p9 = scmp.eq.s32.totalorder %s24_s26, 0  ;;  %p34_p12 = scmp.ne.s32.totalorder %s577_s14, %s573_s13 }
  0x20   : > { %p35_p10 = scmp.eq.s32.totalorder %s581_s15, 0  ;;  %p417_p2 = scmp.lt.s32.totalorder %s581_s15, 2 }
  0x21   : > { %s681_s5 = scalar_select %p25_p9, %s577_s14, %s27_s25  }
  0x22   : > { %p36_p13 = por %p35_p10, %p34_p12  ;;  %p791_p0 = scmp.eq.s32.totalorder %s631_s16, 1 }
  0x23   : > { %s148_s7 = sand.u32 1, %s577_s14   ;;  %s372_s8 = sshll.u32 %s581_s15, 7 }
  0x24   : > { %p685_p3 = por %p791_p0, %p34_p12  ;;  %s371_s9 = sshll.u32 %s148_s7, 3 }
  0x25   : > { %s694_s17 = scalar_lea.hbm %s779_s0, %s372_s8  ;;  %s152_s21 = scalar_lea.vmem [#allocation2], %s371_s9 }
  0x26   : > { %s792_s6 = scalar_select %p685_p3, 1, 0 }
  0x27   : > { %s159_s22 = sshll.u32 %s152_s21, 4  ;;  %p696_p11 = pnand %p417_p2, %p36_p13  ;;  %s160_s22 = int_to_ptr.vmem [resolvable:$true] %s159_s22 }
  0x28   : > { %s149_s25 = scalar_lea.sflag [#allocation3], %s148_s7  ;;  %s485_s26 = scalar_lea.hbm %s694_s17, 128 }
  0x29   : > { %p486_p5 = scmp.ne.s32.totalorder %s694_s17, %s485_s26  ;;  %p487_p7 = pneg %p696_p11 }
  0x2a   : > { %s490_s29 = scalar_lea.hbm %s779_s0, 256  ;;  %p491_p10 = scmp.lt.s32.totalorder %s694_s17, %s779_s0 }
  0x2b   : > { %p488_p9 = pnand %p487_p7, %p486_p5  ;;  %p492_p2 = scmp.lt.s32.totalorder %s490_s29, %s485_s26 }
  0x2d   : > { %p489_p12 = pneg %p488_p9  ;;  %p493_p13 = por %p492_p2, %p491_p10 }
  0x2f   : > { %p494_p0 = pnand %p493_p13, %p489_p12 }
  0x31   : > { %497 = shalt.err (!%p494_p0)
}
  0x32   : > { %s498_s8 = scalar_lea.vmem %s160_s22, 128  ;;  %s586_s7 = smov [#allocation2]  }
  0x33   : > { %p499_p1 = scmp.ne.s32.totalorder %s160_s22, %s498_s8  ;;  %s503_s9 = sshll.u32 %s586_s7, 4  ;;  %s504_s9 = int_to_ptr.vmem [resolvable:$false] %s503_s9 }
  0x34   : > { %s505_s10 = scalar_lea.vmem %s504_s9, 256  ;;  %p506_p5 = scmp.lt.s32.totalorder %s160_s22, %s504_s9 }
  0x35   : > { %p501_p6 = pnand %p499_p1, %p487_p7  ;;  %p507_p9 = scmp.lt.s32.totalorder %s505_s10, %s498_s8 }
  0x37   : > { %p502_p3 = pneg %p501_p6  ;;  %p508_p4 = por %p507_p9, %p506_p5 }
  0x39   : > { %p509_p8 = pnand %p508_p4, %p502_p3 }
  0x3b   : > { %512 = shalt.err (!%p509_p8)
}
  0x3c   : > { %411 = dma.hbm_to_vmem [thread:$0]  (!%p696_p11), %s694_s17, 128, %s160_s22, %s149_s25  }
  0x3d   : > { %p794_p12 = scmp.ne.s32.totalorder %s789_s20, 0 }
  0x3e   : > { %s717_s11 = sand.u32 (!%p794_p12), 1, %s573_s13   ;;  %p795_p1 = scmp.ne.s32.totalorder (!%p794_p12), %s787_s18, 0 }
  0x3f   : > { %168 = sbr.rel (%p794_p12) target bundleno = 292 (0x124), region = 32  ;;  %s374_s21 = sshll.u32 (!%p794_p12), %s717_s11, 3 }
  0x40   : > { %s171_s26 = scalar_lea.sflag (!%p794_p12), [#allocation3], %s717_s11  ;;  %s174_s27 = scalar_lea.vmem (!%p794_p12), [#allocation2], %s374_s21 }
  0x44   : > { %556 = dma.done.wait (%p795_p1), %s171_s26, 128  }
  0x45   : > { %558 = vsyncadd (%p795_p1), %s171_s26, 4294967168  ;;  %p796_p4 = scmp.eq.s32.totalorder %s631_s16, 0 }
  0x47   : > { %560 = dma.done.wait (%p796_p4), [#allocation6], 256   ;;  %p797_p6 = pmov %p796_p4 }
  0x48   : > { %v587_v0 = vmov 0.0   ;;  %vm588_vm0 = vmmov 0   ;;  %v457_v1 = vld [vmem:[#allocation5 + $0x8] sm:$0xff]   ;;  %v458_v2 = vld [vmem:[#allocation5] sm:$0xff]   ;;  %v202_v3 = vld [vmem:[%s174_s27] sm:$0xff]  ;;  %vm227_vm1 = vcmask 261120  }
  0x49   : > { %562 = vsyncadd (%p797_p6), [#allocation6], 4294967040  ;;  %388 = vmatprep.subr.bf16.mxu0 %v587_v0  ;;  %392 = vmatprep.mubr.msk.bf16.mxu0 %vm588_vm0, %v587_v0  ;;  %v203_v4 = vpack.c.bf16 %v202_v3, %v202_v3  ;;  %v377_v5 = vld [vmem:[%s781_s2] ss:$0 sm:$0xff]  ;;  %s382_s17 = sshll.u32 %s631_s16, 7  ;;  %s200_s22 = scalar_lea.vmem [#allocation7], %s374_s21 }
  0x4a   : > { %389 = vmatpush3.bf16.msra.mxu0 %v457_v1  ;;  %s287_s23 = sshll.u32 %s200_s22, 4  ;;  %s736_s29 = scalar_lea.hbm %s782_s3, %s382_s17  ;;  %s738_s23 = int_to_ptr.vmem [resolvable:$true] %s287_s23 }
  0x4b   : > { %390 = vmatprep.subr.bf16.mxu0 %v587_v0  ;;  %s274_s30 = scalar_lea.sflag [#allocation4], %s717_s11  ;;  %s513_s16 = scalar_lea.vmem %s738_s23, 128 }
  0x4c   : > { %p514_p8 = scmp.ne.s32.totalorder %s738_s23, %s513_s16  ;;  %p798_p3 = scmp.ne.s32.totalorder %s792_s6, 0 }
  0x4d   : > { %s589_s4 = smov [#allocation7]  }
  0x4e   : > { %391 = vmatpush3.bf16.msra.mxu0 %v458_v2  ;;  %p515_p11 = pnand %p514_p8, %p798_p3  ;;  %s517_s8 = sshll.u32 %s589_s4, 4  ;;  %s518_s8 = int_to_ptr.vmem [resolvable:$false] %s517_s8 }
  0x4f   : > { %s519_s7 = scalar_lea.vmem %s518_s8, 256  ;;  %p520_p10 = scmp.lt.s32.totalorder %s738_s23, %s518_s8 }
  0x50   : > { %p516_p7 = pneg %p515_p11  ;;  %p521_p2 = scmp.lt.s32.totalorder %s519_s7, %s513_s16 }
  0x51   : > { %393 = vmatmul.mubr.msk.bf16.vlgmr.msra.gmra.mxu0 %vm227_vm1, %v203_v4 }
  0x52   : > { %p522_p13 = por %p521_p2, %p520_p10 }
  0x54   : > { %p523_p0 = pnand %p522_p13, %p516_p7 }
 0x111   : > { %v265_v6 = vpop.f32.mrf.mxu0 }
 0x112   : > { %v266_v7 = vadd.f32 %v377_v5, %v265_v6 }
 0x113   : > { %v394_v8 = vpop.f32.mrf.mxu0 }
 0x114   : > { %v271_v9 = vadd.f32 %v266_v7, %v202_v3 }
 0x115   : > { %v268_v10 = vpop.f32.mrf.mxu0 }
 0x116   : > { %272 = vst.msk [vmem:[%s200_s22] sm:$0xff] %vm227_vm1, %v271_v9 }
 0x117   : > { %v395_v11 = vpop.f32.mrf.mxu0 }
 0x118   : > { %526 = shalt.err (!%p523_p0)
}
 0x119   : > { %s527_s9 = scalar_lea.hbm %s736_s29, 128  ;;  %s531_s21 = scalar_lea.hbm %s782_s3, 256 }
 0x11a   : > { %p528_p5 = scmp.ne.s32.totalorder %s736_s29, %s527_s9  ;;  %p532_p1 = scmp.lt.s32.totalorder %s736_s29, %s782_s3 }
 0x11b   : > { %p533_p4 = scmp.lt.s32.totalorder %s531_s21, %s527_s9 }
 0x11c   : > { %p529_p9 = pnand %p528_p5, %p798_p3 }
 0x11d   : > { %p534_p6 = por %p533_p4, %p532_p1 }
 0x11e   : > { %p530_p12 = pneg %p529_p9 }
 0x120   : > { %p535_p8 = pnand %p534_p6, %p530_p12 }
 0x122   : > { %538 = shalt.err (!%p535_p8)
}
 0x123   : > { %402 = dma.vmem_to_hbm [thread:$0]  (%p798_p3), %s738_s23, 128, %s736_s29, %s274_s30  }
 0x124 PF: > { %s299_s18 = sand.u32 1, %s569_s12   ;;  %p799_p11 = scmp.ne.s32.totalorder %s788_s19, 0 }
 0x125   : > { %p800_p7 = scmp.ge.s32.totalorder %s581_s15, 2  ;;  %s300_s20 = scalar_lea.sflag [#allocation4], %s299_s18 }
 0x127   : > { %p413_p10 = pnand %p800_p7, %p799_p11 }
 0x129   : > { %p414_p2 = pneg %p413_p10 }
 0x12b   : > { %564 = dma.done.wait (%p414_p2), %s300_s20, 128  }
 0x12c   : > { %566 = vsyncadd (%p414_p2), %s300_s20, 4294967168  ;;  %p17_p13 = scmp.ge.s32.totalorder %s664_s24, 4   ;;  %s801_s12 = smov %s573_s13 }
 0x12d   : > { %s802_s13 = smov %s577_s14  ;;  %s803_s14 = smov %s681_s5 }
 0x12e   : > { %s804_s15 = smov %s664_s24  ;;  %19 = sbr.rel (!%p17_p13) target bundleno = 6 (0x6), region = 81 }
 0x133   :  { %305 = vsyncpa [#allocation3], 1 }
 0x134   :  { %307 = vsyncpa [#allocation3 + $0x1], 1 }
 0x135   :  { %308 = vsyncpa [#allocation6], 1 }
 0x136   :  { %309 = vsyncpa [#allocation4], 1 }
 0x137   :  { %311 = vsyncpa [#allocation4 + $0x1], 1 }

</bundles_post_ra>
